<compile_context>
chip_gen: v6e
topology: v6e:2x2x1
jax: 0.10.0
libtpu: 0.0.40
codegen_flags: <defaults>
</compile_context>

<pallas_src>
import math
import functools

import jax
import jax.numpy as jnp
from jax.experimental import pallas as pl
from jax.experimental.pallas import tpu as pltpu

_NEG = -1e30  # finite "minus infinity": avoids NaN when a row is fully masked


def _attention_kernel(q_ref, k_ref, v_ref, m_ref,
                      wq_ref, bq_ref, wk_ref, bk_ref,
                      wv_ref, bv_ref, wo_ref, bo_ref,
                      o_ref, ctx_ref, *, num_heads, head_size, approx_recip):
    bb, tq, S = q_ref.shape
    tk = k_ref.shape[1]
    cdt = q_ref.dtype            # MXU operand dtype (f32 or bf16); accumulate in f32

    # ---- fused input projections: one (bb*T, S) x (S, S) GEMM per weight ---------
    qx = q_ref[...].reshape(bb * tq, S)
    kx = k_ref[...].reshape(bb * tk, S)
    vx = v_ref[...].reshape(bb * tk, S)

    qp = (jnp.dot(qx, wq_ref[...], preferred_element_type=jnp.float32)
          + bq_ref[...]).astype(cdt)          # 1/sqrt(hd) already folded into wq/bq
    kp = (jnp.dot(kx, wk_ref[...], preferred_element_type=jnp.float32)
          + bk_ref[...]).astype(cdt)
    vp = (jnp.dot(vx, wv_ref[...], preferred_element_type=jnp.float32)
          + bv_ref[...]).astype(cdt)

    # mask: int8 (bb, tq, tk); nonzero == keep. Computed once, reused for all heads.
    keep = m_ref[...].astype(jnp.float32) != 0.0

    # ---- per-head scaled-dot-product attention, batched over the batch block -----
    for h in range(num_heads):               # small static unroll
        sl = slice(h * head_size, (h + 1) * head_size)
        qh = qp[:, sl].reshape(bb, tq, head_size)
        kh = kp[:, sl].reshape(bb, tk, head_size)
        vh = vp[:, sl].reshape(bb, tk, head_size)

        # contraction over the last dim of both operands -> no explicit kh.T
        s = jnp.einsum("bqd,bkd->bqk", qh, kh,
                       preferred_element_type=jnp.float32)      # (bb, tq, tk) f32
        s = jnp.where(keep, s, _NEG)

        # softmax stats in f32; normalization deferred past the PV matmul
        row_max = jnp.max(s, axis=-1, keepdims=True)
        e = jnp.exp(s - row_max)
        l = jnp.sum(e, axis=-1, keepdims=True)                  # (bb, tq, 1)

        c = jnp.einsum("bqk,bkd->bqd", e.astype(cdt), vh,
                       preferred_element_type=jnp.float32)      # (bb, tq, hd) f32
        c = c * pl.reciprocal(l, approx=approx_recip)           # EUP, not a big divide

        ctx_ref[:, sl] = c.reshape(bb * tq, head_size).astype(cdt)

    # ---- single output GEMM over the assembled (bb*T, S) context slab ------------
    out = jnp.dot(ctx_ref[...], wo_ref[...],
                  preferred_element_type=jnp.float32) + bo_ref[...]
    o_ref[...] = out.reshape(bb, tq, S).astype(o_ref.dtype)


def attention_forward(q, k, v, mask, params, *, num_heads, block_b=None):
    """q, k, v: (B, T, S); mask: (B, 1, Tq, Tk) bool (True = attend).
    params: PyTorch-layout weights wq/wk/wv/wo (out, in) and biases bq/bk/bv/bo (out,).
    block_b: batch elements processed per grid step."""
    B, Tq, S = q.shape
    Tk = k.shape[1]
    assert S % num_heads == 0
    head_size = S // num_heads
    cdt = q.dtype

    if block_b is None:
        block_b = min(B, 8)
    while B % block_b:            # keep the grid exact for this demo
        block_b -= 1
    nblk = B // block_b

    f32 = jnp.float32
    scale = 1.0 / math.sqrt(head_size)
    # (out, in) -> (in, out) so the kernel computes x @ W + b; fold scale into q proj.
    wq = (params["wq"].astype(f32).T * scale).astype(cdt)
    bq = (params["bq"].astype(f32) * scale).reshape(1, S)
    wk = params["wk"].astype(cdt).T
    bk = params["bk"].astype(f32).reshape(1, S)
    wv = params["wv"].astype(cdt).T
    bv = params["bv"].astype(f32).reshape(1, S)
    wo = params["wo"].astype(cdt).T
    bo = params["bo"].astype(f32).reshape(1, S)

    # mask as int8: 4x less HBM/VMEM traffic than int32
    mask_i8 = mask.reshape(B, Tq, Tk).astype(jnp.int8)

    kernel = functools.partial(
        _attention_kernel, num_heads=num_heads, head_size=head_size,
        approx_recip=(cdt != jnp.float32))   # exact reciprocal for the f32 path

    batched = lambda bs: pl.BlockSpec(bs, lambda b: (b, 0, 0))
    shared = lambda bs: pl.BlockSpec(bs, lambda b: (0, 0))

    return pl.pallas_call(
        kernel,
        out_shape=jax.ShapeDtypeStruct((B, Tq, S), q.dtype),
        grid_spec=pltpu.PrefetchScalarGridSpec(
            num_scalar_prefetch=0,
            grid=(nblk,),
            in_specs=[
                batched((block_b, Tq, S)),    # q
                batched((block_b, Tk, S)),    # k
                batched((block_b, Tk, S)),    # v
                batched((block_b, Tq, Tk)),   # mask (int8)
                shared((S, S)), shared((1, S)),   # wq, bq (scale folded in)
                shared((S, S)), shared((1, S)),   # wk, bk
                shared((S, S)), shared((1, S)),   # wv, bv
                shared((S, S)), shared((1, S)),   # wo, bo
            ],
            out_specs=batched((block_b, Tq, S)),
            scratch_shapes=[pltpu.VMEM((block_b * Tq, S), cdt)],   # context slab
        ),
        compiler_params=pltpu.CompilerParams(
            dimension_semantics=("parallel",),
            # explicit budget; re-derive per generation (v7x has 64 MiB physical VMEM)
            vmem_limit_bytes=64 * 1024 * 1024,
        ),
    )(q, k, v, mask_i8, wq, bq, wk, bk, wv, bv, wo, bo)


def attention_reference(q, k, v, mask, params, *, num_heads):
    """Pure-JAX reference mirroring the PyTorch forward."""
    B, Tq, S = q.shape
    hd = S // num_heads
    lin = lambda x, w, b: x @ w.T + b
    kp = lin(k, params["wk"], params["bk"]).reshape(B, -1, num_heads, hd).transpose(0, 2, 1, 3)
    vp = lin(v, params["wv"], params["bv"]).reshape(B, -1, num_heads, hd).transpose(0, 2, 1, 3)
    qp = lin(q, params["wq"], params["bq"]).reshape(B, -1, num_heads, hd).transpose(0, 2, 1, 3)
    qp = qp / math.sqrt(hd)
    scores = jnp.einsum("bhqd,bhkd->bhqk", qp, kp)
    scores = jnp.where(mask, scores, -jnp.inf)
    attn = jax.nn.softmax(scores, axis=-1)
    ctx = jnp.einsum("bhqk,bhkd->bhqd", attn, vp)
    ctx = ctx.transpose(0, 2, 1, 3).reshape(B, -1, S)
    return lin(ctx, params["wo"], params["bo"])


if __name__ == "__main__":
    B, T, S, H = 4, 8, 32, 2

    key = jax.random.PRNGKey(0)
    keys = jax.random.split(key, 12)
    init = lambda kk, shape: jax.random.normal(kk, shape, jnp.float32) * 0.05

    params = {
        "wq": init(keys[0], (S, S)), "bq": init(keys[1], (S,)),
        "wk": init(keys[2], (S, S)), "bk": init(keys[3], (S,)),
        "wv": init(keys[4], (S, S)), "bv": init(keys[5], (S,)),
        "wo": init(keys[6], (S, S)), "bo": init(keys[7], (S,)),
    }

    q = jax.random.normal(keys[8], (B, T, S), jnp.float32)
    k = jax.random.normal(keys[9], (B, T, S), jnp.float32)
    v = jax.random.normal(keys[10], (B, T, S), jnp.float32)
    # mask: True = attend, False = masked out; broadcast over heads like PyTorch.
    mask = jax.random.bernoulli(keys[11], 0.8, (B, 1, T, T))
    # ensure no fully-masked row (PyTorch would produce NaN there; kernel stays finite)
    mask = mask.at[:, :, :, 0].set(True)

    # ---- float32 path -----------------------------------------------------------
    out = jax.block_until_ready(
        attention_forward(q, k, v, mask, params, num_heads=H, block_b=2))
    ref = attention_reference(q, k, v, mask, params, num_heads=H)
    assert jnp.allclose(out, ref, atol=1e-4, rtol=1e-4), "f32 mismatch vs reference"

    # ---- bfloat16 operands (MXU-native), f32 accumulation + f32 softmax stats ----
    qb, kb, vb = (x.astype(jnp.bfloat16) for x in (q, k, v))
    pb = {n: p.astype(jnp.bfloat16) for n, p in params.items()}
    out_bf = jax.block_until_ready(
        attention_forward(qb, kb, vb, mask, pb, num_heads=H, block_b=2))
    ref_bf = attention_reference(
        qb.astype(jnp.float32), kb.astype(jnp.float32), vb.astype(jnp.float32),
        mask, {n: p.astype(jnp.float32) for n, p in pb.items()}, num_heads=H)
    assert jnp.allclose(out_bf.astype(jnp.float32), ref_bf, atol=5e-2, rtol=5e-2), \
        "bf16 mismatch vs reference"

    print("KERNEL_OK")
</pallas_src>

<mosaic_0001>
module attributes {stable_mosaic.version = 11 : i64} {
  func.func @_attention_kernel(%arg0: i32, %arg1: memref<2x8x32xf32, #tpu.memory_space<vmem>>, %arg2: memref<2x8x32xf32, #tpu.memory_space<vmem>>, %arg3: memref<2x8x32xf32, #tpu.memory_space<vmem>>, %arg4: memref<2x8x8xi8, #tpu.memory_space<vmem>>, %arg5: memref<32x32xf32, #tpu.memory_space<vmem>>, %arg6: memref<1x32xf32, #tpu.memory_space<vmem>>, %arg7: memref<32x32xf32, #tpu.memory_space<vmem>>, %arg8: memref<1x32xf32, #tpu.memory_space<vmem>>, %arg9: memref<32x32xf32, #tpu.memory_space<vmem>>, %arg10: memref<1x32xf32, #tpu.memory_space<vmem>>, %arg11: memref<32x32xf32, #tpu.memory_space<vmem>>, %arg12: memref<1x32xf32, #tpu.memory_space<vmem>>, %arg13: memref<2x8x32xf32, #tpu.memory_space<vmem>>, %arg14: memref<16x32xf32, #tpu.memory_space<vmem>>) attributes {dimension_semantics = [#tpu.dimension_semantics<parallel>], iteration_bounds = array<i64: 2>, scalar_prefetch = 0 : i64, scratch_operands = 1 : i64, tpu.core_type = #tpu.core_type<tc>, window_params = [{transform_indices = @transform_0, window_bounds = array<i64: 2, 8, 32>}, {transform_indices = @transform_1, window_bounds = array<i64: 2, 8, 32>}, {transform_indices = @transform_2, window_bounds = array<i64: 2, 8, 32>}, {transform_indices = @transform_3, window_bounds = array<i64: 2, 8, 8>}, {pipeline_mode = #tpu.pipeline_mode<synchronous>, transform_indices = @transform_4, window_bounds = array<i64: 32, 32>}, {pipeline_mode = #tpu.pipeline_mode<synchronous>, transform_indices = @transform_5, window_bounds = array<i64: 1, 32>}, {pipeline_mode = #tpu.pipeline_mode<synchronous>, transform_indices = @transform_6, window_bounds = array<i64: 32, 32>}, {pipeline_mode = #tpu.pipeline_mode<synchronous>, transform_indices = @transform_7, window_bounds = array<i64: 1, 32>}, {pipeline_mode = #tpu.pipeline_mode<synchronous>, transform_indices = @transform_8, window_bounds = array<i64: 32, 32>}, {pipeline_mode = #tpu.pipeline_mode<synchronous>, transform_indices = @transform_9, window_bounds = array<i64: 1, 32>}, {pipeline_mode = #tpu.pipeline_mode<synchronous>, transform_indices = @transform_10, window_bounds = array<i64: 32, 32>}, {pipeline_mode = #tpu.pipeline_mode<synchronous>, transform_indices = @transform_11, window_bounds = array<i64: 1, 32>}, {transform_indices = @transform_12, window_bounds = array<i64: 2, 8, 32>}]} {
    %c0 = arith.constant 0 : index
    %c0_0 = arith.constant 0 : index
    %c0_1 = arith.constant 0 : index
    %0 = vector.load %arg1[%c0, %c0_0, %c0_1] : memref<2x8x32xf32, #tpu.memory_space<vmem>>, vector<2x8x32xf32>
    %1 = vector.shape_cast %0 : vector<2x8x32xf32> to vector<16x32xf32>
    %c0_2 = arith.constant 0 : index
    %c0_3 = arith.constant 0 : index
    %c0_4 = arith.constant 0 : index
    %2 = vector.load %arg2[%c0_2, %c0_3, %c0_4] : memref<2x8x32xf32, #tpu.memory_space<vmem>>, vector<2x8x32xf32>
    %3 = vector.shape_cast %2 : vector<2x8x32xf32> to vector<16x32xf32>
    %c0_5 = arith.constant 0 : index
    %c0_6 = arith.constant 0 : index
    %c0_7 = arith.constant 0 : index
    %4 = vector.load %arg3[%c0_5, %c0_6, %c0_7] : memref<2x8x32xf32, #tpu.memory_space<vmem>>, vector<2x8x32xf32>
    %5 = vector.shape_cast %4 : vector<2x8x32xf32> to vector<16x32xf32>
    %c0_8 = arith.constant 0 : index
    %c0_9 = arith.constant 0 : index
    %6 = vector.load %arg5[%c0_8, %c0_9] : memref<32x32xf32, #tpu.memory_space<vmem>>, vector<32x32xf32>
    %cst = arith.constant dense<0.000000e+00> : vector<16x32xf32>
    %7 = tpu.matmul %1, %6, %cst {dimension_numbers = #tpu.dot_dimension_numbers<[1], [0], [0], [1], [0, 0, 1, 1], [], []>} : vector<16x32xf32>, vector<32x32xf32>, vector<16x32xf32> -> vector<16x32xf32>
    %c0_10 = arith.constant 0 : index
    %c0_11 = arith.constant 0 : index
    %8 = vector.load %arg6[%c0_10, %c0_11] : memref<1x32xf32, #tpu.memory_space<vmem>>, vector<1x32xf32>
    %9 = vector.broadcast %8 : vector<1x32xf32> to vector<16x32xf32>
    %10 = arith.addf %7, %9 : vector<16x32xf32>
    %c0_12 = arith.constant 0 : index
    %c0_13 = arith.constant 0 : index
    %11 = vector.load %arg7[%c0_12, %c0_13] : memref<32x32xf32, #tpu.memory_space<vmem>>, vector<32x32xf32>
    %cst_14 = arith.constant dense<0.000000e+00> : vector<16x32xf32>
    %12 = tpu.matmul %3, %11, %cst_14 {dimension_numbers = #tpu.dot_dimension_numbers<[1], [0], [0], [1], [0, 0, 1, 1], [], []>} : vector<16x32xf32>, vector<32x32xf32>, vector<16x32xf32> -> vector<16x32xf32>
    %c0_15 = arith.constant 0 : index
    %c0_16 = arith.constant 0 : index
    %13 = vector.load %arg8[%c0_15, %c0_16] : memref<1x32xf32, #tpu.memory_space<vmem>>, vector<1x32xf32>
    %14 = vector.broadcast %13 : vector<1x32xf32> to vector<16x32xf32>
    %15 = arith.addf %12, %14 : vector<16x32xf32>
    %c0_17 = arith.constant 0 : index
    %c0_18 = arith.constant 0 : index
    %16 = vector.load %arg9[%c0_17, %c0_18] : memref<32x32xf32, #tpu.memory_space<vmem>>, vector<32x32xf32>
    %cst_19 = arith.constant dense<0.000000e+00> : vector<16x32xf32>
    %17 = tpu.matmul %5, %16, %cst_19 {dimension_numbers = #tpu.dot_dimension_numbers<[1], [0], [0], [1], [0, 0, 1, 1], [], []>} : vector<16x32xf32>, vector<32x32xf32>, vector<16x32xf32> -> vector<16x32xf32>
    %c0_20 = arith.constant 0 : index
    %c0_21 = arith.constant 0 : index
    %18 = vector.load %arg10[%c0_20, %c0_21] : memref<1x32xf32, #tpu.memory_space<vmem>>, vector<1x32xf32>
    %19 = vector.broadcast %18 : vector<1x32xf32> to vector<16x32xf32>
    %20 = arith.addf %17, %19 : vector<16x32xf32>
    %c0_22 = arith.constant 0 : index
    %c0_23 = arith.constant 0 : index
    %c0_24 = arith.constant 0 : index
    %21 = vector.load %arg4[%c0_22, %c0_23, %c0_24] : memref<2x8x8xi8, #tpu.memory_space<vmem>>, vector<2x8x8xi8>
    %22 = arith.sitofp %21 : vector<2x8x8xi8> to vector<2x8x8xf32>
    %cst_25 = arith.constant 0.000000e+00 : f32
    %23 = vector.broadcast %cst_25 : f32 to vector<2x8x8xf32>
    %24 = arith.cmpf one, %22, %23 : vector<2x8x8xf32>
    %25 = vector.extract_strided_slice %10 {offsets = [0, 0], sizes = [16, 16], strides = [1, 1]} : vector<16x32xf32> to vector<16x16xf32>
    %26 = vector.shape_cast %25 : vector<16x16xf32> to vector<2x8x16xf32>
    %27 = vector.extract_strided_slice %15 {offsets = [0, 0], sizes = [16, 16], strides = [1, 1]} : vector<16x32xf32> to vector<16x16xf32>
    %28 = vector.shape_cast %27 : vector<16x16xf32> to vector<2x8x16xf32>
    %29 = vector.extract_strided_slice %20 {offsets = [0, 0], sizes = [16, 16], strides = [1, 1]} : vector<16x32xf32> to vector<16x16xf32>
    %30 = vector.shape_cast %29 : vector<16x16xf32> to vector<2x8x16xf32>
    "tpu.trace_start"() <{level = 10 : i32, message = "bqd,bkd->bqk"}> : () -> ()
    %cst_26 = arith.constant dense<0.000000e+00> : vector<2x8x8xf32>
    %31 = tpu.matmul %26, %28, %cst_26 {dimension_numbers = #tpu.dot_dimension_numbers<[2], [2], [1], [1], [0, 0, 0, 1, 1, 1], [0], [0]>} : vector<2x8x16xf32>, vector<2x8x16xf32>, vector<2x8x8xf32> -> vector<2x8x8xf32>
    %cst_27 = arith.constant -1.000000e+30 : f32
    "tpu.trace_stop"() : () -> ()
    %32 = vector.broadcast %cst_27 : f32 to vector<2x8x8xf32>
    %33 = arith.select %24, %31, %32 : vector<2x8x8xi1>, vector<2x8x8xf32>
    %cst_28 = arith.constant dense<0xFF800000> : vector<2x8xf32>
    %34 = vector.multi_reduction <maximumf>, %33, %cst_28 [2] : vector<2x8x8xf32> to vector<2x8xf32>
    %35 = vector.shape_cast %34 : vector<2x8xf32> to vector<2x8x1xf32>
    %36 = vector.broadcast %35 : vector<2x8x1xf32> to vector<2x8x8xf32>
    %37 = arith.subf %33, %36 : vector<2x8x8xf32>
    %38 = math.exp %37 : vector<2x8x8xf32>
    %cst_29 = arith.constant dense<0.000000e+00> : vector<2x8xf32>
    %39 = vector.multi_reduction <add>, %38, %cst_29 [2] : vector<2x8x8xf32> to vector<2x8xf32>
    %40 = vector.shape_cast %39 : vector<2x8xf32> to vector<2x8x1xf32>
    "tpu.trace_start"() <{level = 10 : i32, message = "bqk,bkd->bqd"}> : () -> ()
    %cst_30 = arith.constant dense<0.000000e+00> : vector<2x8x16xf32>
    %41 = tpu.matmul %38, %30, %cst_30 {dimension_numbers = #tpu.dot_dimension_numbers<[2], [1], [1], [2], [0, 0, 0, 1, 1, 2], [0], [0]>} : vector<2x8x8xf32>, vector<2x8x16xf32>, vector<2x8x16xf32> -> vector<2x8x16xf32>
    "tpu.trace_stop"() : () -> ()
    %42 = tpu.reciprocal %40 : vector<2x8x1xf32> -> vector<2x8x1xf32>
    %43 = vector.broadcast %42 : vector<2x8x1xf32> to vector<2x8x16xf32>
    %44 = arith.mulf %41, %43 : vector<2x8x16xf32>
    %45 = vector.shape_cast %44 : vector<2x8x16xf32> to vector<16x16xf32>
    %c0_31 = arith.constant 0 : index
    %c0_32 = arith.constant 0 : index
    %46 = vector.load %arg14[%c0_31, %c0_32] : memref<16x32xf32, #tpu.memory_space<vmem>>, vector<16x16xf32>
    tpu.vector_store %arg14[%c0_31, %c0_32], %45 {strides = array<i32>} : memref<16x32xf32, #tpu.memory_space<vmem>>, vector<16x16xf32>,
    %47 = vector.extract_strided_slice %10 {offsets = [0, 16], sizes = [16, 16], strides = [1, 1]} : vector<16x32xf32> to vector<16x16xf32>
    %48 = vector.shape_cast %47 : vector<16x16xf32> to vector<2x8x16xf32>
    %49 = vector.extract_strided_slice %15 {offsets = [0, 16], sizes = [16, 16], strides = [1, 1]} : vector<16x32xf32> to vector<16x16xf32>
    %50 = vector.shape_cast %49 : vector<16x16xf32> to vector<2x8x16xf32>
    %51 = vector.extract_strided_slice %20 {offsets = [0, 16], sizes = [16, 16], strides = [1, 1]} : vector<16x32xf32> to vector<16x16xf32>
    %52 = vector.shape_cast %51 : vector<16x16xf32> to vector<2x8x16xf32>
    "tpu.trace_start"() <{level = 10 : i32, message = "bqd,bkd->bqk"}> : () -> ()
    %cst_33 = arith.constant dense<0.000000e+00> : vector<2x8x8xf32>
    %53 = tpu.matmul %48, %50, %cst_33 {dimension_numbers = #tpu.dot_dimension_numbers<[2], [2], [1], [1], [0, 0, 0, 1, 1, 1], [0], [0]>} : vector<2x8x16xf32>, vector<2x8x16xf32>, vector<2x8x8xf32> -> vector<2x8x8xf32>
    %cst_34 = arith.constant -1.000000e+30 : f32
    "tpu.trace_stop"() : () -> ()
    %54 = vector.broadcast %cst_34 : f32 to vector<2x8x8xf32>
    %55 = arith.select %24, %53, %54 : vector<2x8x8xi1>, vector<2x8x8xf32>
    %cst_35 = arith.constant dense<0xFF800000> : vector<2x8xf32>
    %56 = vector.multi_reduction <maximumf>, %55, %cst_35 [2] : vector<2x8x8xf32> to vector<2x8xf32>
    %57 = vector.shape_cast %56 : vector<2x8xf32> to vector<2x8x1xf32>
    %58 = vector.broadcast %57 : vector<2x8x1xf32> to vector<2x8x8xf32>
    %59 = arith.subf %55, %58 : vector<2x8x8xf32>
    %60 = math.exp %59 : vector<2x8x8xf32>
    %cst_36 = arith.constant dense<0.000000e+00> : vector<2x8xf32>
    %61 = vector.multi_reduction <add>, %60, %cst_36 [2] : vector<2x8x8xf32> to vector<2x8xf32>
    %62 = vector.shape_cast %61 : vector<2x8xf32> to vector<2x8x1xf32>
    "tpu.trace_start"() <{level = 10 : i32, message = "bqk,bkd->bqd"}> : () -> ()
    %cst_37 = arith.constant dense<0.000000e+00> : vector<2x8x16xf32>
    %63 = tpu.matmul %60, %52, %cst_37 {dimension_numbers = #tpu.dot_dimension_numbers<[2], [1], [1], [2], [0, 0, 0, 1, 1, 2], [0], [0]>} : vector<2x8x8xf32>, vector<2x8x16xf32>, vector<2x8x16xf32> -> vector<2x8x16xf32>
    "tpu.trace_stop"() : () -> ()
    %64 = tpu.reciprocal %62 : vector<2x8x1xf32> -> vector<2x8x1xf32>
    %65 = vector.broadcast %64 : vector<2x8x1xf32> to vector<2x8x16xf32>
    %66 = arith.mulf %63, %65 : vector<2x8x16xf32>
    %67 = vector.shape_cast %66 : vector<2x8x16xf32> to vector<16x16xf32>
    %c0_38 = arith.constant 0 : index
    %c16 = arith.constant 16 : index
    %68 = vector.load %arg14[%c0_38, %c16] : memref<16x32xf32, #tpu.memory_space<vmem>>, vector<16x16xf32>
    tpu.vector_store %arg14[%c0_38, %c16], %67 {strides = array<i32>} : memref<16x32xf32, #tpu.memory_space<vmem>>, vector<16x16xf32>,
    %c0_39 = arith.constant 0 : index
    %c0_40 = arith.constant 0 : index
    %69 = vector.load %arg14[%c0_39, %c0_40] : memref<16x32xf32, #tpu.memory_space<vmem>>, vector<16x32xf32>
    %c0_41 = arith.constant 0 : index
    %c0_42 = arith.constant 0 : index
    %70 = vector.load %arg11[%c0_41, %c0_42] : memref<32x32xf32, #tpu.memory_space<vmem>>, vector<32x32xf32>
    %cst_43 = arith.constant dense<0.000000e+00> : vector<16x32xf32>
    %71 = tpu.matmul %69, %70, %cst_43 {dimension_numbers = #tpu.dot_dimension_numbers<[1], [0], [0], [1], [0, 0, 1, 1], [], []>} : vector<16x32xf32>, vector<32x32xf32>, vector<16x32xf32> -> vector<16x32xf32>
    %c0_44 = arith.constant 0 : index
    %c0_45 = arith.constant 0 : index
    %72 = vector.load %arg12[%c0_44, %c0_45] : memref<1x32xf32, #tpu.memory_space<vmem>>, vector<1x32xf32>
    %73 = vector.broadcast %72 : vector<1x32xf32> to vector<16x32xf32>
    %74 = arith.addf %71, %73 : vector<16x32xf32>
    %75 = vector.shape_cast %74 : vector<16x32xf32> to vector<2x8x32xf32>
    %c0_46 = arith.constant 0 : index
    %c0_47 = arith.constant 0 : index
    %c0_48 = arith.constant 0 : index
    %76 = vector.load %arg13[%c0_46, %c0_47, %c0_48] : memref<2x8x32xf32, #tpu.memory_space<vmem>>, vector<2x8x32xf32>
    tpu.vector_store %arg13[%c0_46, %c0_47, %c0_48], %75 {strides = array<i32>} : memref<2x8x32xf32, #tpu.memory_space<vmem>>, vector<2x8x32xf32>,
    return
  }
  func.func @transform_0(%arg0: i32) -> (i32, i32, i32) {
    %c0_i32 = arith.constant 0 : i32
    %c0_i32_0 = arith.constant 0 : i32
    %c0_i32_1 = arith.constant 0 : i32
    return %arg0, %c0_i32, %c0_i32_0 : i32, i32, i32
  }
  func.func @transform_1(%arg0: i32) -> (i32, i32, i32) {
    %c0_i32 = arith.constant 0 : i32
    %c0_i32_0 = arith.constant 0 : i32
    %c0_i32_1 = arith.constant 0 : i32
    return %arg0, %c0_i32, %c0_i32_0 : i32, i32, i32
  }
  func.func @transform_2(%arg0: i32) -> (i32, i32, i32) {
    %c0_i32 = arith.constant 0 : i32
    %c0_i32_0 = arith.constant 0 : i32
    %c0_i32_1 = arith.constant 0 : i32
    return %arg0, %c0_i32, %c0_i32_0 : i32, i32, i32
  }
  func.func @transform_3(%arg0: i32) -> (i32, i32, i32) {
    %c0_i32 = arith.constant 0 : i32
    %c0_i32_0 = arith.constant 0 : i32
    %c0_i32_1 = arith.constant 0 : i32
    return %arg0, %c0_i32, %c0_i32_0 : i32, i32, i32
  }
  func.func @transform_4(%arg0: i32) -> (i32, i32) {
    %c0_i32 = arith.constant 0 : i32
    %c0_i32_0 = arith.constant 0 : i32
    %c0_i32_1 = arith.constant 0 : i32
    return %c0_i32, %c0_i32_0 : i32, i32
  }
  func.func @transform_5(%arg0: i32) -> (i32, i32) {
    %c0_i32 = arith.constant 0 : i32
    %c0_i32_0 = arith.constant 0 : i32
    %c0_i32_1 = arith.constant 0 : i32
    return %c0_i32, %c0_i32_0 : i32, i32
  }
  func.func @transform_6(%arg0: i32) -> (i32, i32) {
    %c0_i32 = arith.constant 0 : i32
    %c0_i32_0 = arith.constant 0 : i32
    %c0_i32_1 = arith.constant 0 : i32
    return %c0_i32, %c0_i32_0 : i32, i32
  }
  func.func @transform_7(%arg0: i32) -> (i32, i32) {
    %c0_i32 = arith.constant 0 : i32
    %c0_i32_0 = arith.constant 0 : i32
    %c0_i32_1 = arith.constant 0 : i32
    return %c0_i32, %c0_i32_0 : i32, i32
  }
  func.func @transform_8(%arg0: i32) -> (i32, i32) {
    %c0_i32 = arith.constant 0 : i32
    %c0_i32_0 = arith.constant 0 : i32
    %c0_i32_1 = arith.constant 0 : i32
    return %c0_i32, %c0_i32_0 : i32, i32
  }
  func.func @transform_9(%arg0: i32) -> (i32, i32) {
    %c0_i32 = arith.constant 0 : i32
    %c0_i32_0 = arith.constant 0 : i32
    %c0_i32_1 = arith.constant 0 : i32
    return %c0_i32, %c0_i32_0 : i32, i32
  }
  func.func @transform_10(%arg0: i32) -> (i32, i32) {
    %c0_i32 = arith.constant 0 : i32
    %c0_i32_0 = arith.constant 0 : i32
    %c0_i32_1 = arith.constant 0 : i32
    return %c0_i32, %c0_i32_0 : i32, i32
  }
  func.func @transform_11(%arg0: i32) -> (i32, i32) {
    %c0_i32 = arith.constant 0 : i32
    %c0_i32_0 = arith.constant 0 : i32
    %c0_i32_1 = arith.constant 0 : i32
    return %c0_i32, %c0_i32_0 : i32, i32
  }
  func.func @transform_12(%arg0: i32) -> (i32, i32, i32) {
    %c0_i32 = arith.constant 0 : i32
    %c0_i32_0 = arith.constant 0 : i32
    %c0_i32_1 = arith.constant 0 : i32
    return %arg0, %c0_i32, %c0_i32_0 : i32, i32, i32
  }
}

</mosaic_0001>

<bundles_post_ra>
// kernel: tpu_custom_call.1
= control target key start
LH: loop header
LB: loop body
LE: loop exit
PB: predicated region body
PF: predicated region fallthrough
CT: control target
= control target key end

     0   :  { %s3018_s0 = inlined_call_operand.hbm [shape: f32[4,8,32], index: 0, kind: input, shape index: {}]   ;;  %s3019_s1 = inlined_call_operand.hbm [shape: f32[4,8,32], index: 1, kind: input, shape index: {}]   ;;  %s3020_s2 = inlined_call_operand.hbm [shape: f32[4,8,32], index: 2, kind: input, shape index: {}]   ;;  %s3021_s3 = inlined_call_operand.hbm [shape: s8[4,8,8], index: 3, kind: input, shape index: {}]   ;;  %s3022_s4 = inlined_call_operand.hbm [shape: f32[32,32], index: 4, kind: input, shape index: {}]   ;;  %s3023_s5 = inlined_call_operand.vmem [shape: f32[1,32], index: 5, kind: input, shape index: {}]   ;;  %s3024_s6 = inlined_call_operand.hbm [shape: f32[32,32], index: 6, kind: input, shape index: {}]   ;;  %s3025_s7 = inlined_call_operand.vmem [shape: f32[1,32], index: 7, kind: input, shape index: {}]   ;;  %s3026_s8 = inlined_call_operand.hbm [shape: f32[32,32], index: 8, kind: input, shape index: {}]   ;;  %s3027_s9 = inlined_call_operand.vmem [shape: f32[1,32], index: 9, kind: input, shape index: {}]   ;;  %s3028_s10 = inlined_call_operand.hbm [shape: f32[32,32], index: 10, kind: input, shape index: {}]   ;;  %s3029_s11 = inlined_call_operand.vmem [shape: f32[1,32], index: 11, kind: input, shape index: {}]   ;;  %s3030_s12 = inlined_call_operand.hbm [shape: f32[4,8,32], index: 12, kind: output, shape index: {}]  }
   0x1   :  { %3051 = sst [smem:[#allocation31_spill]] %s3019_s1 }
   0x2   :  { %3052 = sst [smem:[#allocation32_spill]] %s3022_s4 }
   0x3   :  { %3053 = sst [smem:[#allocation33_spill]] %s3024_s6 }
   0x4   :  { %3054 = sst [smem:[#allocation34_spill]] %s3026_s8 }
   0x5   :  { %3055 = sst [smem:[#allocation35_spill]] %s3027_s9 }
   0x6   :  { %3056 = sst [smem:[#allocation36_spill]] %s3028_s10 }
   0x7   :  { %3057 = sst [smem:[#allocation37_spill]] %s3029_s11 }
   0x8   :  { %3058 = sst [smem:[#allocation38_spill]] %s3030_s12 }
   0x9   :  { %17 = vsyncpa [#allocation4], 0 }
   0xa   :  { %19 = vsyncpa [#allocation4 + $0x1], 0 }
   0xb   :  { %20 = vsyncpa [#allocation7], 0 }
   0xc   :  { %22 = vsyncpa [#allocation7 + $0x1], 0 }
   0xd   :  { %23 = vsyncpa [#allocation10], 0 }
   0xe   :  { %25 = vsyncpa [#allocation10 + $0x1], 0 }
   0xf   :  { %26 = vsyncpa [#allocation13], 0 }
  0x10   :  { %27 = vsyncpa [#allocation16], 0 }
  0x11   :  { %28 = vsyncpa [#allocation5], 0 }
  0x12   :  { %30 = vsyncpa [#allocation5 + $0x1], 0  ;;  %s2566_s21 = smov 0   ;;  %s2568_s22 = smov 0  }
  0x13   :  { %s2570_s23 = smov 0   ;;  %s2572_s24 = smov 0  }
  0x14 LB: > { %3059 = sst [smem:[#allocation25_spill]] %s2468_s21  ;;  %s2587_s25 = sadd.s32 4294967295, %s2480_s24   ;;  %s2480_s24 = sphi %s2572_s24, %s3100_s24   ;;  %s2476_s23 = sphi %s2570_s23, %s3102_s23   ;;  %s2472_s22 = sphi %s2568_s22, %s3104_s22   ;;  %s2468_s21 = sphi %s2566_s21, %s3103_s21  }
  0x15   : > { %3060 = sst [smem:[#allocation26_spill]] %s2476_s23  ;;  %s1861_s26 = sadd.s32 4294967294, %s2480_s24  }
  0x16   : > { %p56_p0 = scmp.ne.s32.totalorder %s2472_s22, %s2468_s21  ;;  %p3043_p1 = scmp.eq.s32.totalorder %s2587_s25, 0 }
  0x17   : > { %p326_p2 = scmp.eq.s32.totalorder %s2587_s25, 1  ;;  %p332_p3 = scmp.eq.s32.totalorder %s1861_s26, 1 }
  0x18   : > { %p2596_p4 = por %p3043_p1, %p56_p0  ;;  %p1862_p5 = scmp.ge.s32.totalorder %s2480_s24, 1 }
  0x19   : > { %p2601_p6 = por %p332_p3, %p56_p0  ;;  %p339_p7 = scmp.lt.s32.totalorder %s2480_s24, 3 }
  0x1a   : > { %s3061_s27 = scalar_select %p2596_p4, 1, 0 }
  0x1b   : > { %s3062_s28 = scalar_select %p2601_p6, 1, 0 }
  0x1c   : > { %p2606_p8 = pnand %p1862_p5, %p339_p7  ;;  %s2482_s30 = smov [#allocation11]  }
  0x1d   : > { %3063 = sst [smem:[#allocation27_spill]] %s3062_s28  ;;  %s351_s13 = sshll.u32 %s2482_s30, 4  ;;  %s352_s13 = int_to_ptr.vmem [resolvable:$true] %s351_s13 }
  0x1e   : > { %s3064_s29 = scalar_select %p2606_p8, 1, 0 }
  0x1f   : > { %p2078_p9 = pneg %p2606_p8  ;;  %s2483_s15 = smov [#allocation12]  }
  0x20   : > { %s367_s16 = sshll.u32 %s2483_s15, 4  ;;  %s2191_s17 = scalar_lea.vmem %s352_s13, 512  ;;  %s368_s16 = int_to_ptr.vmem [resolvable:$true] %s367_s16 }
  0x21   : > { %p2615_p11 = pnand %p2078_p9, %p3043_p1  ;;  %p2192_p13 = scmp.ne.s32.totalorder %s352_s13, %s2191_s17 }
  0x22   : > { %p2199_p5 = scmp.lt.s32.totalorder %s352_s13, %s352_s13  ;;  %p2200_p7 = scmp.lt.s32.totalorder %s2191_s17, %s2191_s17 }
  0x23   : > { %s3065_s14 = scalar_select %p2615_p11, 1, 0 }
  0x24   : > { %p3044_p12 = pneg %p2615_p11  ;;  %p2201_p10 = por %p2200_p7, %p2199_p5 }
  0x26   : > { %p2194_p0 = pnand %p2192_p13, %p3044_p12 }
  0x28   : > { %p2195_p3 = pneg %p2194_p0 }
  0x2a   : > { %p2202_p9 = pnand %p2201_p10, %p2195_p3 }
  0x2c   : > { %2205 = shalt.err (!%p2202_p9)
}
  0x2d   : > { %s3031_s18 = smov 128   ;;  %s3033_s19 = smov 8  }
  0x2e   : > { %s3066_s4 = sld [smem:[#allocation32_spill]]  ;;  %s2217_s30 = scalar_lea.vmem %s368_s16, 512 }
  0x2f   : > { %p2218_p13 = scmp.ne.s32.totalorder %s368_s16, %s2217_s30  ;;  %p2225_p10 = scmp.lt.s32.totalorder %s368_s16, %s368_s16 }
  0x30   : > { %p2226_p3 = scmp.lt.s32.totalorder %s2217_s30, %s2217_s30 }
  0x31   : > { %p2220_p0 = pnand %p2218_p13, %p3044_p12 }
  0x32   : > { %p2227_p7 = por %p2226_p3, %p2225_p10 }
  0x33   : > { %p2221_p5 = pneg %p2220_p0 }
  0x34   : > { %2081 = dma.hbm_to_vmem [thread:$0]  (!%p2615_p11), %s3066_s4, 512, %s352_s13, [#allocation10], %s3031_s18, %s3031_s18, %s3033_s19  }
  0x35   : > { %p2228_p9 = pnand %p2227_p7, %p2221_p5 }
  0x37   : > { %2231 = shalt.err (!%p2228_p9)
}
  0x38   : > { %s3067_s6 = sld [smem:[#allocation33_spill]]  ;;  %s2644_s13 = sadd.s32 1, %s2480_s24  }
  0x39   : > { %3068 = sst [smem:[#allocation28_spill]] %s2644_s13  ;;  %s43_s20 = sadd.s32 1, %s2476_s23 }
  0x3a   : > { %s40_s26 = ssub.s32 %s2480_s24, %s2644_s13  ;;  %p50_p13 = scmp.ne.s32.totalorder %s2476_s23, %s2472_s22 }
  0x3b   : > { %p41_p0 = scmp.eq.s32.totalorder %s40_s26, 0  ;;  %p51_p5 = scmp.eq.s32.totalorder %s2480_s24, 0 }
  0x3c   : > { %p2654_p10 = por %p326_p2, %p50_p13  ;;  %p2112_p3 = scmp.lt.s32.totalorder %s2480_s24, 2 }
  0x3d   : > { %s2660_s15 = scalar_select %p41_p0, %s2476_s23, %s43_s20  }
  0x3e   : > { %2084 = dma.hbm_to_vmem [thread:$0]  (!%p2615_p11), %s3067_s6, 512, %s368_s16, [#allocation13], %s3031_s18, %s3031_s18, %s3033_s19  }
  0x3f   : > { %s3069_s30 = scalar_select %p2654_p10, 1, 0 }
  0x40   : > { %3071 = sst [smem:[#allocation30_spill]] %s2660_s15  ;;  %p52_p7 = por %p51_p5, %p50_p13 }
  0x41   : > { %3070 = sst [smem:[#allocation29_spill]] %s3069_s30  ;;  %s2663_s17 = sand.u32 1, %s2476_s23  }
  0x42   : > { %s2666_s16 = sshll.u32 %s2663_s17, 4  ;;  %s2669_s18 = sshll.u32 %s2480_s24, 8 }
  0x43   : > { %p2671_p9 = pnand %p2112_p3, %p52_p7  ;;  %s3045_s19 = sand.u32 1, %s2480_s24  }
  0x44   : > { %s3073_s1 = sld [smem:[#allocation31_spill]]  ;;  %s441_s15 = scalar_lea.vmem [#allocation6], %s2666_s16 }
  0x45   : > { %s448_s23 = sshll.u32 %s441_s15, 4  ;;  %s2687_s13 = scalar_lea.sflag [#allocation7], %s3045_s19  ;;  %s2683_s23 = int_to_ptr.vmem [resolvable:$true] %s448_s23 }
  0x46   : > { %p2693_p13 = pneg %p2671_p9 }
  0x4a   : > { %s2680_s20 = scalar_lea.hbm %s3073_s1, %s2669_s18  ;;  %s2237_s15 = scalar_lea.hbm %s3073_s1, 512 }
  0x4b   : > { %s2232_s28 = scalar_lea.hbm %s2680_s20, 256  ;;  %p2238_p3 = scmp.lt.s32.totalorder %s2680_s20, %s3073_s1 }
  0x4c   : > { %p2233_p2 = scmp.ne.s32.totalorder %s2680_s20, %s2232_s28  ;;  %p2239_p7 = scmp.lt.s32.totalorder %s2237_s15, %s2232_s28 }
  0x4e   : > { %p2235_p0 = pnand %p2693_p13, %p2233_p2  ;;  %p2240_p1 = por %p2239_p7, %p2238_p3 }
  0x50   : > { %p2236_p5 = pneg %p2235_p0 }
  0x52   : > { %p2241_p12 = pnand %p2240_p1, %p2236_p5 }
  0x54   : > { %2244 = shalt.err (!%p2241_p12)
}
  0x55   : > { %s2245_s19 = scalar_lea.vmem %s2683_s23, 256  ;;  %s2486_s11 = smov [#allocation6]  }
  0x56   : > { %p2246_p6 = scmp.ne.s32.totalorder %s2683_s23, %s2245_s19  ;;  %s2250_s4 = sshll.u32 %s2486_s11, 4  ;;  %s2251_s4 = int_to_ptr.vmem [resolvable:$false] %s2250_s4 }
  0x57   : > { %s2252_s6 = scalar_lea.vmem %s2251_s4, 512  ;;  %p2253_p10 = scmp.lt.s32.totalorder %s2683_s23, %s2251_s4 }
  0x58   : > { %p2248_p2 = pnand %p2246_p6, %p2693_p13  ;;  %p2254_p4 = scmp.lt.s32.totalorder %s2252_s6, %s2245_s19 }
  0x5a   : > { %p2249_p0 = pneg %p2248_p2  ;;  %p2255_p8 = por %p2254_p4, %p2253_p10 }
  0x5c   : > { %p2256_p11 = pnand %p2255_p8, %p2249_p0 }
  0x5e   : > { %2259 = shalt.err (!%p2256_p11)
}
  0x5f   : > { %s3075_s12 = smov 8   ;;  %s3076_s28 = smov 128  }
  0x60   : > { %2097 = dma.hbm_to_vmem [thread:$0]  (!%p2671_p9), %s2680_s20, 256, %s2683_s23, %s2687_s13, %s3076_s28, %s3076_s28, %s3075_s12  }
  0x61   : > { %s2487_s30 = smov [#allocation14]   ;;  %s2488_s11 = smov [#allocation15]  }
  0x62   : > { %s383_s15 = sshll.u32 %s2487_s30, 4  ;;  %s399_s1 = sshll.u32 %s2488_s11, 4  ;;  %s384_s15 = int_to_ptr.vmem [resolvable:$true] %s383_s15  ;;  %s400_s1 = int_to_ptr.vmem [resolvable:$true] %s399_s1 }
  0x63   : > { %s2271_s4 = scalar_lea.vmem %s384_s15, 512  ;;  %p3077_p4 = scmp.ne.s32.totalorder %s3065_s14, 0 }
  0x64   : > { %p2272_p1 = scmp.ne.s32.totalorder %s384_s15, %s2271_s4  ;;  %p2279_p12 = scmp.lt.s32.totalorder %s384_s15, %s384_s15 }
  0x65   : > { %p3078_p6 = pneg %p3077_p4  ;;  %p2280_p10 = scmp.lt.s32.totalorder %s2271_s4, %s2271_s4 }
  0x67   : > { %p2274_p8 = pnand %p2272_p1, %p3078_p6  ;;  %p2281_p5 = por %p2280_p10, %p2279_p12 }
  0x69   : > { %p2275_p11 = pneg %p2274_p8 }
  0x6b   : > { %p2282_p3 = pnand %p2281_p5, %p2275_p11 }
  0x6d   : > { %2285 = shalt.err (!%p2282_p3)
}
  0x6e   : > { %s3079_s8 = sld [smem:[#allocation34_spill]]  ;;  %s2297_s20 = scalar_lea.vmem %s400_s1, 512 }
  0x6f   : > { %p2298_p7 = scmp.ne.s32.totalorder %s400_s1, %s2297_s20  ;;  %p3080_p2 = pmov %p3078_p6 }
  0x70   : > { %p2305_p6 = scmp.lt.s32.totalorder %s400_s1, %s400_s1  ;;  %p2306_p8 = scmp.lt.s32.totalorder %s2297_s20, %s2297_s20 }
  0x71   : > { %p2300_p0 = pnand %p2298_p7, %p3080_p2 }
  0x72   : > { %p2307_p11 = por %p2306_p8, %p2305_p6 }
  0x73   : > { %p2301_p1 = pneg %p2300_p0 }
  0x74   : > { %2087 = dma.hbm_to_vmem [thread:$0]  (!%p3077_p4), %s3079_s8, 512, %s384_s15, [#allocation13], %s3076_s28, %s3076_s28, %s3075_s12  }
  0x75   : > { %p2308_p12 = pnand %p2307_p11, %p2301_p1 }
  0x77   : > { %2311 = shalt.err (!%p2308_p12)
}
  0x78   : > { %s3081_s10 = sld [smem:[#allocation36_spill]]  ;;  %s2745_s4 = scalar_lea.hbm %s3018_s0, %s2669_s18 }
  0x79   : > { %s420_s14 = scalar_lea.vmem [#allocation3], %s2666_s16  ;;  %s2754_s6 = scalar_lea.hbm %s3020_s2, %s2669_s18 }
  0x7a   : > { %s427_s23 = sshll.u32 %s420_s14, 4  ;;  %s417_s30 = scalar_lea.sflag [#allocation4], %s2663_s17  ;;  %s2748_s23 = int_to_ptr.vmem [resolvable:$true] %s427_s23 }
  0x7b   : > { %s2312_s8 = scalar_lea.hbm %s2745_s4, 256  ;;  %s2317_s11 = scalar_lea.hbm %s3018_s0, 512 }
  0x7c   : > { %p2318_p3 = scmp.lt.s32.totalorder %s2745_s4, %s3018_s0  ;;  %p2319_p7 = scmp.lt.s32.totalorder %s2317_s11, %s2312_s8 }
  0x7e   : > { %2090 = dma.hbm_to_vmem [thread:$0]  (!%p3077_p4), %s3081_s10, 512, %s400_s1, [#allocation16], %s3076_s28, %s3076_s28, %s3075_s12  }
  0x7f   : > { %p2313_p4 = scmp.ne.s32.totalorder %s2745_s4, %s2312_s8  ;;  %p2320_p2 = por %p2319_p7, %p2318_p3 }
  0x81   : > { %p2315_p10 = pnand %p2313_p4, %p2693_p13 }
  0x83   : > { %p2316_p5 = pneg %p2315_p10 }
  0x85   : > { %p2321_p0 = pnand %p2320_p2, %p2316_p5 }
  0x87   : > { %2324 = shalt.err (!%p2321_p0)
}
  0x88   : > { %s2325_s18 = scalar_lea.vmem %s2748_s23, 256  ;;  %s2489_s14 = smov [#allocation3]  }
  0x89   : > { %p2326_p1 = scmp.ne.s32.totalorder %s2748_s23, %s2325_s18  ;;  %s2330_s19 = sshll.u32 %s2489_s14, 4  ;;  %s2331_s19 = int_to_ptr.vmem [resolvable:$false] %s2330_s19 }
  0x8a   : > { %s2332_s20 = scalar_lea.vmem %s2331_s19, 512  ;;  %p2333_p11 = scmp.lt.s32.totalorder %s2748_s23, %s2331_s19 }
  0x8b   : > { %p2328_p6 = pnand %p2326_p1, %p2693_p13  ;;  %p2334_p12 = scmp.lt.s32.totalorder %s2332_s20, %s2325_s18 }
  0x8d   : > { %p2329_p8 = pneg %p2328_p6  ;;  %p2335_p4 = por %p2334_p12, %p2333_p11 }
  0x8f   : > { %p2336_p10 = pnand %p2335_p4, %p2329_p8 }
  0x91   : > { %2339 = shalt.err (!%p2336_p10)
}
  0x92   : > { %2094 = dma.hbm_to_vmem [thread:$0]  (!%p2671_p9), %s2745_s4, 256, %s2748_s23, %s417_s30, %s3076_s28, %s3076_s28, %s3075_s12  }
  0x93   : > { %s462_s8 = scalar_lea.vmem [#allocation8], %s2666_s16  ;;  %s1877_s10 = sshll.u32 %s2663_s17, 2 }
  0x94   : > { %s469_s9 = sshll.u32 %s462_s8, 4  ;;  %s2340_s1 = scalar_lea.hbm %s2754_s6, 256  ;;  %s470_s9 = int_to_ptr.vmem [resolvable:$true] %s469_s9 }
  0x95   : > { %p2341_p5 = scmp.ne.s32.totalorder %s2754_s6, %s2340_s1  ;;  %s2345_s18 = scalar_lea.hbm %s3020_s2, 512 }
  0x96   : > { %p2346_p2 = scmp.lt.s32.totalorder %s2754_s6, %s3020_s2  ;;  %p2347_p0 = scmp.lt.s32.totalorder %s2345_s18, %s2340_s1 }
  0x97   : > { %p2343_p3 = pnand %p2341_p5, %p2693_p13 }
  0x98   : > { %p2348_p1 = por %p2347_p0, %p2346_p2 }
  0x99   : > { %p2344_p7 = pneg %p2343_p3 }
  0x9b   : > { %p2349_p6 = pnand %p2348_p1, %p2344_p7 }
  0x9d   : > { %2352 = shalt.err (!%p2349_p6)
}
  0x9e   : > { %s2353_s16 = scalar_lea.vmem %s470_s9, 256  ;;  %s2490_s4 = smov [#allocation8]  }
  0x9f   : > { %p2354_p8 = scmp.ne.s32.totalorder %s470_s9, %s2353_s16  ;;  %s2358_s23 = sshll.u32 %s2490_s4, 4  ;;  %s2359_s23 = int_to_ptr.vmem [resolvable:$false] %s2358_s23 }
  0xa0   : > { %s2360_s30 = scalar_lea.vmem %s2359_s23, 512  ;;  %p2361_p4 = scmp.lt.s32.totalorder %s470_s9, %s2359_s23 }
  0xa1   : > { %p2356_p11 = pnand %p2354_p8, %p2693_p13  ;;  %p2362_p10 = scmp.lt.s32.totalorder %s2360_s30, %s2353_s16 }
  0xa3   : > { %p2357_p12 = pneg %p2356_p11  ;;  %p2363_p5 = por %p2362_p10, %p2361_p4 }
  0xa5   : > { %p2364_p3 = pnand %p2363_p5, %p2357_p12 }
  0xa7   : > { %2367 = shalt.err (!%p2364_p3)
}
  0xa8   : > { %2100 = dma.hbm_to_vmem [thread:$0]  (!%p2671_p9), %s2754_s6, 256, %s470_s9, %s2687_s13, %s3076_s28, %s3076_s28, %s3075_s12  }
  0xa9   : > { %s1922_s20 = sshll.u32 %s2480_s24, 6  ;;  %s483_s8 = scalar_lea.vmem [#allocation9], %s1877_s10 }
  0xaa   : > { %s490_s1 = sshll.u32 %s483_s8, 4  ;;  %s2808_s18 = scalar_lea.hbm %s3021_s3, %s1922_s20  ;;  %s2810_s1 = int_to_ptr.vmem [resolvable:$true] %s490_s1 }
  0xab   : > { %s3082_s14 = sand.u32 1, %s2480_s24   ;;  %s2368_s16 = scalar_lea.hbm %s2808_s18, 64 }
  0xac   : > { %s2814_s19 = scalar_lea.sflag [#allocation10], %s3082_s14  ;;  %p2369_p7 = scmp.ne.s32.totalorder %s2808_s18, %s2368_s16 }
  0xad   : > { %s2373_s12 = scalar_lea.hbm %s3021_s3, 128  ;;  %p2374_p1 = scmp.lt.s32.totalorder %s2808_s18, %s3021_s3 }
  0xae   : > { %p2371_p2 = pnand %p2369_p7, %p2693_p13  ;;  %p2375_p6 = scmp.lt.s32.totalorder %s2373_s12, %s2368_s16 }
  0xb0   : > { %p2372_p0 = pneg %p2371_p2  ;;  %p2376_p8 = por %p2375_p6, %p2374_p1 }
  0xb2   : > { %p2377_p11 = pnand %p2376_p8, %p2372_p0 }
  0xb4   : > { %2380 = shalt.err (!%p2377_p11)
}
  0xb5   : > { %s2381_s9 = scalar_lea.vmem %s2810_s1, 64  ;;  %s2491_s10 = smov [#allocation9]  }
  0xb6   : > { %p2382_p12 = scmp.ne.s32.totalorder %s2810_s1, %s2381_s9  ;;  %s2386_s4 = sshll.u32 %s2491_s10, 4  ;;  %s2387_s4 = int_to_ptr.vmem [resolvable:$false] %s2386_s4 }
  0xb7   : > { %s2388_s23 = scalar_lea.vmem %s2387_s4, 128  ;;  %p2389_p5 = scmp.lt.s32.totalorder %s2810_s1, %s2387_s4 }
  0xb8   : > { %p2384_p4 = pnand %p2382_p12, %p2693_p13  ;;  %p2390_p3 = scmp.lt.s32.totalorder %s2388_s23, %s2381_s9 }
  0xba   : > { %p2385_p10 = pneg %p2384_p4  ;;  %p2391_p7 = por %p2390_p3, %p2389_p5 }
  0xbc   : > { %p2392_p2 = pnand %p2391_p7, %p2385_p10 }
  0xbe   : > { %2395 = shalt.err (!%p2392_p2)
}
  0xbf   : > { %s2492_s30 = smov 32   ;;  %s2493_s20 = smov 2  }
  0xc0   : > { %2103 = dma.hbm_to_vmem [thread:$0]  (!%p2671_p9), %s2808_s18, 64, %s2810_s1, %s2814_s19, %s2492_s30, %s2492_s30, %s2493_s20  }
  0xc1   : > { %p3083_p13 = scmp.ne.s32.totalorder %s3064_s29, 0 }
  0xc2   : > { %s2840_s21 = sand.u32 (!%p3083_p13), 1, %s2472_s22   ;;  %p3084_p0 = scmp.ne.s32.totalorder (!%p3083_p13), %s3061_s27, 0 }
  0xc3   : > { %502 = sbr.rel (%p3083_p13) target bundleno = 1665 (0x681), region = 68  ;;  %s2843_s8 = sshll.u32 (!%p3083_p13), %s2840_s21, 4 }
  0xc4   : > { %s505_s15 = scalar_lea.sflag (!%p3083_p13), [#allocation4], %s2840_s21  ;;  %s508_s11 = scalar_lea.vmem (!%p3083_p13), [#allocation3], %s2843_s8 }
  0xc8   : > { %2439 = dma.done.wait (%p3084_p0), %s505_s15, 256  }
  0xc9   : > { %2441 = vsyncadd (%p3084_p0), %s505_s15, 4294967040  ;;  %s513_s29 = sand.u32 1, %s2587_s25   ;;  %s517_s1 = scalar_lea.vmem [#allocation6], %s2843_s8 }
  0xca   : > { %s514_s26 = scalar_lea.sflag [#allocation7], %s513_s29 }
  0xcb   : > { %2443 = dma.done.wait (%p3084_p0), %s514_s26, 512  }
  0xcc   : > { %2445 = vsyncadd (%p3084_p0), %s514_s26, 4294966784  ;;  %s1884_s18 = sshll.u32 %s2840_s21, 2  ;;  %s526_s14 = scalar_lea.vmem [#allocation8], %s2843_s8 }
  0xcd   : > { %s532_s19 = scalar_lea.sflag [#allocation10], %s513_s29  ;;  %s2859_s16 = scalar_lea.vmem [#allocation9], %s1884_s18 }
  0xce   : > { %2447 = dma.done.wait (%p3084_p0), %s532_s19, 64  }
  0xcf   : > { %2449 = vsyncadd (%p3084_p0), %s532_s19, 4294967232  ;;  %p3085_p9 = scmp.eq.s32.totalorder %s2587_s25, 0 }
  0xd1   : > { %2451 = dma.done.wait (%p3085_p9), [#allocation10], 512   ;;  %p3086_p1 = pmov %p3085_p9 }
  0xd3   : > { %2453 = vsyncadd (%p3086_p1), [#allocation10], 4294966784  ;;  %p3087_p6 = pmov %p3086_p1 }
  0xd4   : > { %p3088_p8 = pmov %p3086_p1 }
  0xd5   : > { %2455 = dma.done.wait (%p3087_p6), [#allocation13], 1024  }
  0xd6   : > { %2457 = vsyncadd (%p3088_p8), [#allocation13], 4294966272  ;;  %p3089_p11 = pmov %p3086_p1 }
  0xd7   : > { %p3090_p12 = pmov %p3086_p1 }
  0xd8   : > { %2459 = dma.done.wait (%p3089_p11), [#allocation16], 512  }
  0xd9   : > { %2461 = vsyncadd (%p3090_p12), [#allocation16], 4294966784  ;;  %v714_v0 = vld [vmem:[#allocation12 + $0x18] sm:$0xff]  ;;  %v713_v2 = vld [vmem:[#allocation12 + $0x10] sm:$0xff]  ;;  %vm629_vm0 = vcmask 261120   ;;  %v2494_v12 = vmov 0.0  }
  0xda   : > { %v621_v1 = vld [vmem:[#allocation11 + $0x18] sm:$0xff]  ;;  %1979 = vmatprep.subr.mxu1 %v714_v0  ;;  %v620_v3 = vld [vmem:[#allocation11 + $0x10] sm:$0xff]  ;;  %v712_v4 = vld [vmem:[#allocation12 + $0x8] sm:$0xff]  ;;  %vm2495_vm1 = vmmov 0   ;;  %vm903_vm2 = vcmask 130048   ;;  %s2496_s28 = smov 112  }
  0xdb   : > { %1968 = vmatprep.subr.mxu0 %v621_v1  ;;  %1980 = vmatpush3.msra.mxu1 %v714_v0  ;;  %v619_v5 = vld [vmem:[#allocation11 + $0x8] sm:$0xff]  ;;  %v711_v6 = vld [vmem:[#allocation12] sm:$0xff]  ;;  %v806_v13 = vld [vmem:[#allocation14 + $0x18] sm:$0xff]  ;;  %vm1058_vm4 = vcmask 64512   ;;  %s3091_s10 = sld [smem:[#allocation35_spill]]  ;;  %s2497_s4 = smov 16  }
  0xdc   : > { %1969 = vmatpush3.msra.mxu0 %v621_v1  ;;  %1981 = vmatprep.subr.mxu1 %v713_v2  ;;  %v614_v7 = vld [vmem:[%s517_s1] sm:$0xff]  ;;  %v618_v8 = vld [vmem:[#allocation11] sm:$0xff]  ;;  %v805_v14 = vld [vmem:[#allocation14 + $0x10] sm:$0xff]  ;;  %vm1571_vm6 = vcmask 261248   ;;  %s3092_s20 = sld [smem:[#allocation37_spill]]  ;;  %s1923_s26 = sshll.u32 %s2587_s25, 8 }
  0xdd   : > { %1970 = vmatprep.subr.mxu0 %v620_v3  ;;  %1982 = vmatpush3.msra.mxu1 %v713_v2  ;;  %v615_v9 = vld [vmem:[%s517_s1 + $0x8] sm:$0xff]  ;;  %v612_v10 = vld [vmem:[%s508_s11] sm:$0xff]  ;;  %s3093_s15 = sld [smem:[#allocation29_spill]] }
  0xde   : > { %1971 = vmatpush3.msra.mxu0 %v620_v3  ;;  %1983 = vmatprep.subr.mxu1 %v712_v4  ;;  %v613_v11 = vld [vmem:[%s508_s11 + $0x8] sm:$0xff]  ;;  %v804_v15 = vld [vmem:[#allocation14 + $0x8] sm:$0xff]  ;;  %v1925_v30 = vld [vmem:[%s2859_s16] sm:$0xf]   ;;  %s606_s11 = scalar_lea.vmem [#allocation17], %s2843_s8  ;;  %s1671_s8 = scalar_lea.sflag [#allocation5], %s2840_s21 }
  0xdf   : > { %1972 = vmatprep.subr.mxu0 %v619_v5  ;;  %1984 = vmatpush3.msra.mxu1 %v712_v4  ;;  %v803_v16 = vld [vmem:[#allocation14] sm:$0xff]  ;;  %v616_v17 = vld [vmem:[%s526_s14] sm:$0xff]  ;;  %v1926_v31 = vunpack.c.0.s8 %v1925_v30  ;;  %v1927_v33 = vunpack.c.1.s8 %v1925_v30  ;;  %s1684_s29 = sshll.u32 %s606_s11, 4  ;;  %s2498_s16 = smov [#allocation17]   ;;  %s2968_s29 = int_to_ptr.vmem [resolvable:$true] %s1684_s29 }
  0xe0   : > { %1973 = vmatpush3.msra.mxu0 %v619_v5  ;;  %1985 = vmatprep.subr.mxu1 %v711_v6  ;;  %v617_v18 = vld [vmem:[%s526_s14 + $0x8] sm:$0xff]  ;;  %v1893_v20 = vld [vmem:[%s3025_s7] ss:$0 sm:$0xff]  ;;  %s3094_s14 = sld [smem:[#allocation38_spill]]  ;;  %s2396_s25 = scalar_lea.vmem %s2968_s29, 256 }
  0xe1   : > { %1987 = vmatprep.mubr.msk.f32.mxu1 %vm629_vm0, %v614_v7  ;;  %1986 = vmatpush3.msra.mxu1 %v711_v6  ;;  %v1890_v23 = vld [vmem:[%s3023_s5] ss:$0 sm:$0xff]  ;;  %v899_v32 = vcvt.s32.f32 %v1926_v31  ;;  %v900_v34 = vcvt.s32.f32 %v1927_v33  ;;  %v1579_v33 = vld [vmem:[#allocation15 + $0x18] sm:$0xff]  ;;  %p2397_p4 = scmp.ne.s32.totalorder %s2968_s29, %s2396_s25  ;;  %s2400_s27 = sshll.u32 %s2498_s16, 4  ;;  %s2401_s27 = int_to_ptr.vmem [resolvable:$false] %s2400_s27 }
  0xe2   : > { %1974 = vmatprep.subr.mxu0 %v618_v8  ;;  %1988 = vmatmul.mubr.msk.f32.vlgmr.msra.gmra.mxu1 %vm629_vm0, %v615_v9  ;;  %v1896_v44 = vld [vmem:[%s3091_s10] ss:$0 sm:$0xff]  ;;  %s2402_s13 = scalar_lea.vmem %s2401_s27, 512  ;;  %p2403_p7 = scmp.lt.s32.totalorder %s2968_s29, %s2401_s27 }
  0xe3   : > { %1975 = vmatpush3.msra.mxu0 %v618_v8  ;;  %1976 = vmatprep.mubr.msk.f32.mxu0 %vm629_vm0, %v612_v10  ;;  %vm901_vm3 = vcmp.ne.f32.partialorder %v899_v32, 0.0  ;;  %vm902_vm5 = vcmp.ne.f32.partialorder %v900_v34, 0.0  ;;  %v1578_v34 = vld [vmem:[#allocation15 + $0x10] sm:$0xff]  ;;  %p3095_p10 = scmp.ne.s32.totalorder %s3093_s15, 0  ;;  %p2404_p2 = scmp.lt.s32.totalorder %s2402_s13, %s2396_s25 }
  0xe4   : > { %1977 = vmatmul.mubr.msk.f32.vlgmr.msra.gmra.mxu0 %vm629_vm0, %v613_v11  ;;  %2001 = vmatprep.subr.mxu1 %v2494_v12 }
  0xe5   : > { %2003 = vmatprep.mubr.msk.f32.mxu1 %vm2495_vm1, %v2494_v12  ;;  %1990 = vmatprep.subr.mxu0 %v806_v13  ;;  %p2398_p5 = pnand %p2397_p4, %p3095_p10  ;;  %p2405_p13 = por %p2404_p2, %p2403_p7 }
  0xe6   : > { %1991 = vmatpush3.msra.mxu0 %v806_v13  ;;  %1998 = vmatprep.mubr.msk.f32.mxu0 %vm629_vm0, %v616_v17  ;;  %s2973_s19 = scalar_lea.hbm %s3094_s14, %s1923_s26 }
  0xe7   : > { %1992 = vmatprep.subr.mxu0 %v805_v14  ;;  %p2399_p3 = pneg %p2398_p5 }
  0xe8   : > { %1993 = vmatpush3.msra.mxu0 %v805_v14 }
  0xe9   : > { %1994 = vmatprep.subr.mxu0 %v804_v15  ;;  %p2406_p0 = pnand %p2405_p13, %p2399_p3 }
  0xea   : > { %1995 = vmatpush3.msra.mxu0 %v804_v15 }
  0xeb   : > { %1996 = vmatprep.subr.mxu0 %v803_v16 }
  0xec   : > { %1997 = vmatpush3.msra.mxu0 %v803_v16 }
  0xed   : > { %2021 = vmatprep.subr.mxu0 %v2494_v12  ;;  %1999 = vmatmul.mubr.msk.f32.vlgmr.msra.gmra.mxu0 %vm629_vm0, %v617_v18 }
  0xee   : > { %2023 = vmatprep.mubr.msk.f32.mxu0 %vm2495_vm1, %v2494_v12 }
 0x1a2   : > { %v1989_v19 = vpop.f32.mrf.mxu1 }
 0x1a3   : > { %v800_v27 = vadd.f32 %v1989_v19, %v1893_v20 }
 0x1a4   : > { %v1978_v21 = vpop.f32.mrf.mxu0  ;;  %v794_v22 = vpop.f32.mrf.mxu1 }
 0x1a5   : > { %v795_v24 = vadd.f32 %v1893_v20, %v794_v22  ;;  %v708_v28 = vadd.f32 %v1978_v21, %v1890_v23 }
 0x1a6   : > { %v702_v25 = vpop.f32.mrf.mxu0 }
 0x1a7   : > { %1231 = vrot.lane.b32.xlu1 %v795_v24, %s2496_s28  ;;  %2002 = vmatpush3.xpose.msk.msra.mxu1 %vm903_vm2, %v795_v24  ;;  %v703_v26 = vadd.f32 %v1890_v23, %v702_v25 }
 0x1a8   : > { %2006 = vmatprep.subr.mxu1 %v2494_v12 }
 0x1aa   : > { %2004 = vmatmul.mubr.msk.f32.vlgmr.msra.gmra.mxu1 %vm903_vm2, %v703_v26 }
 0x1ab   : > { %1309 = vrot.lane.b32.xlu1 %v800_v27, %s2496_s28  ;;  %2007 = vmatpush3.xpose.msk.msra.mxu1 %vm903_vm2, %v800_v27 }
 0x1ac   : > { %2008 = vmatprep.mubr.msk.f32.mxu1 %vm2495_vm1, %v2494_v12  ;;  %2011 = vmatprep.subr.mxu1 %v2494_v12 }
 0x1ad   : > { %v2000_v43 = vpop.f32.mrf.mxu0 }
 0x1ae   : > { %2009 = vmatmul.mubr.msk.f32.vlgmr.msra.gmra.mxu1 %vm903_vm2, %v708_v28  ;;  %v892_v45 = vadd.f32 %v2000_v43, %v1896_v44 }
 0x1af   : > { %1307 = vrot.lane.b32.xlu1 %v708_v28, %s2496_s28  ;;  %2013 = vmatprep.mubr.msk.f32.mxu1 %vm2495_vm1, %v2494_v12  ;;  %v886_v46 = vpop.f32.mrf.mxu0 }
 0x1b0   : > { %v887_v47 = vadd.f32 %v1896_v44, %v886_v46 }
 0x1b2   : > { %2012 = vmatpush3.msra.mxu1 %v887_v47 }
 0x1b3   : > { %2016 = vmatprep.subr.mxu1 %v2494_v12 }
 0x219   : > { %v1232_v29 = vpop.permute.xlu1 %1231 }
 0x21a   : > { %2022 = vmatpush3.xpose.msk.msra.mxu0 %vm903_vm2, %v1232_v29 }
 0x21b   : > { %2031 = vmatprep.subr.mxu0 %v2494_v12 }
 0x21d   : > { %v1310_v56 = vpop.permute.xlu1 %1309 }
 0x221   : > { %v1308_v58 = vpop.permute.xlu1 %1307 }
 0x26a   : > { %v976_v35 = vpop.f32.mrf.mxu1 }
 0x26b   : > { %v1056_v36 = vsel %vm901_vm3, %v976_v35, -1e+30  ;;  %v1577_v35 = vld [vmem:[#allocation15 + $0x8] sm:$0xff] }
 0x26c   : > { %v2005_v37 = vpop.f32.mrf.mxu1  ;;  %v1059_v38 = vsel %vm1058_vm4, %v1056_v36, -inf }
 0x26d   : > { %1060 = vmax.xlane.f32.xlu0 %v1059_v38 }
 0x26e   : > { %v1052_v39 = vpop.f32.mrf.mxu1 }
 0x26f   : > { %v1057_v40 = vsel %vm902_vm5, %v1052_v39, -1e+30 }
 0x270   : > { %v2010_v41 = vpop.f32.mrf.mxu1  ;;  %v1062_v42 = vsel %vm1058_vm4, %v1057_v40, -inf }
 0x271   : > { %1063 = vmax.xlane.f32.xlu0 %v1062_v42 }
 0x287   : > { %1229 = vrot.lane.b32.xlu0 %v703_v26, %s2496_s28 }
 0x2f6   : > { %v1061_v48 = vpop.xlane.xlu0 %1060 }
 0x2f7   : > { %v1065_v49 = vsub.f32 %v1056_v36, %v1061_v48  ;;  %v1576_v36 = vld [vmem:[#allocation15] sm:$0xff] }
 0x2f9   : > { %v1067_v50 = vmul.f32 1.442695, %v1065_v49 }
 0x2fa   : > { %v1064_v51 = vpop.xlane.xlu0 %1063 }
 0x2fb   : > { %2164 = vpow2.f32 %v1067_v50  ;;  %v1066_v52 = vsub.f32 %v1057_v40, %v1064_v51 }
 0x2fd   : > { %v1069_v53 = vmul.f32 1.442695, %v1066_v52 }
 0x2fe   : > { %v1230_v54 = vpop.permute.xlu0 %1229 }
 0x2ff   : > { %2166 = vpow2.f32 %v1069_v53  ;;  %2024 = vmatmul.mubr.msk.f32.vlgmr.msra.gmra.mxu0 %vm903_vm2, %v1230_v54 }
 0x300   : > { %2033 = vmatprep.mubr.msk.f32.mxu0 %vm2495_vm1, %v2494_v12 }
 0x308   : > { %v2165_v55 = vpop.eup %2164 }
 0x309   : > { %2014 = vmatmul.mubr.msk.f32.vlgmr.msra.gmra.mxu1 %vm1058_vm4, %v2165_v55  ;;  %v1071_v17 = vsel %vm1058_vm4, %v2165_v55, 0.0 }
 0x30a   : > { %2017 = vmatpush3.msra.mxu1 %v892_v45  ;;  %2018 = vmatprep.mubr.msk.f32.mxu1 %vm2495_vm1, %v2494_v12 }
 0x30b   : > { %2026 = vmatprep.subr.mxu1 %v2494_v12 }
 0x30c   : > { %v2167_v57 = vpop.eup %2166 }
 0x30d   : > { %2019 = vmatmul.mubr.msk.f32.vlgmr.msra.gmra.mxu1 %vm1058_vm4, %v2167_v57  ;;  %v1074_v18 = vsel %vm1058_vm4, %v2167_v57, 0.0 }
 0x30e   : > { %2027 = vmatpush3.xpose.msk.msra.mxu1 %vm903_vm2, %v1310_v56  ;;  %2028 = vmatprep.mubr.msk.f32.mxu1 %vm2495_vm1, %v2494_v12 }
 0x30f   : > { %2036 = vmatprep.subr.mxu1 %v2494_v12 }
 0x311   : > { %2029 = vmatmul.mubr.msk.f32.vlgmr.msra.gmra.mxu1 %vm903_vm2, %v1308_v58 }
 0x312   : > { %2038 = vmatprep.mubr.msk.f32.mxu1 %vm2495_vm1, %v2494_v12 }
 0x3bf   : > { %v1303_v59 = vpop.f32.mrf.mxu0 }
 0x3c0   : > { %v1385_v60 = vsel %vm901_vm3, %v1303_v59, -1e+30 }
 0x3c1   : > { %v2025_v61 = vpop.f32.mrf.mxu0  ;;  %v1387_v62 = vsel %vm1058_vm4, %v1385_v60, -inf }
 0x3c2   : > { %1388 = vmax.xlane.f32.xlu1 %v1387_v62 }
 0x3c9   : > { %v1146_v63 = vpop.f32.mrf.mxu1 }
 0x3cb   : > { %v2015_v0 = vpop.f32.mrf.mxu1 }
 0x3cd   : > { %v1219_v1 = vpop.f32.mrf.mxu1 }
 0x3cf   : > { %v2020_v2 = vpop.f32.mrf.mxu1 }
 0x3d1   : > { %v1381_v3 = vpop.f32.mrf.mxu1 }
 0x3d2   : > { %v1386_v4 = vsel %vm902_vm5, %v1381_v3, -1e+30 }
 0x3d3   : > { %1406 = vrot.lane.b32.xlu1 %v887_v47, %s2496_s28  ;;  %v2030_v5 = vpop.f32.mrf.mxu1  ;;  %v1390_v6 = vsel %vm1058_vm4, %v1386_v4, -inf }
 0x3d4   : > { %1391 = vmax.xlane.f32.xlu0 %v1390_v6 }
 0x3ea   : > { %1483 = vrot.lane.b32.xlu0 %v892_v45, %s2496_s28  ;;  %v1911_v45 = vld [vmem:[%s3092_s20] ss:$0 sm:$0xff] }
 0x44b   : > { %v1389_v7 = vpop.xlane.xlu1 %1388 }
 0x44c   : > { %v1393_v8 = vsub.f32 %v1385_v60, %v1389_v7 }
 0x44e   : > { %v1395_v9 = vmul.f32 1.442695, %v1393_v8 }
 0x44f   : > { %v1407_v10 = vpop.permute.xlu1 %1406 }
 0x450   : > { %2168 = vpow2.f32 %v1395_v9  ;;  %2032 = vmatpush3.msra.mxu0 %v1407_v10 }
 0x451   : > { %2041 = vmatprep.subr.mxu0 %v1579_v33 }
 0x45d   : > { %v2169_v11 = vpop.eup %2168  ;;  %v1392_v12 = vpop.xlane.xlu0 %1391 }
 0x45e   : > { %v1394_v13 = vsub.f32 %v1386_v4, %v1392_v12  ;;  %2034 = vmatmul.mubr.msk.f32.vlgmr.msra.gmra.mxu0 %vm1058_vm4, %v2169_v11  ;;  %v1399_v14 = vsel %vm1058_vm4, %v2169_v11, 0.0 }
 0x45f   : > { %1400 = vadd.xlane.f32.xlu1 %v1399_v14  ;;  %2042 = vmatpush3.msra.mxu0 %v1579_v33 }
 0x460   : > { %v1397_v15 = vmul.f32 1.442695, %v1394_v13  ;;  %2043 = vmatprep.subr.mxu0 %v1578_v34 }
 0x461   : > { %v1484_v16 = vpop.permute.xlu0 %1483  ;;  %2044 = vmatpush3.msra.mxu0 %v1578_v34 }
 0x462   : > { %2170 = vpow2.f32 %v1397_v15  ;;  %2037 = vmatpush3.msra.mxu1 %v1484_v16  ;;  %2045 = vmatprep.subr.mxu0 %v1577_v35 }
 0x463   : > { %1072 = vadd.xlane.f32.xlu1 %v1071_v17  ;;  %2046 = vmatpush3.msra.mxu0 %v1577_v35 }
 0x464   : > { %2047 = vmatprep.subr.mxu0 %v1576_v36 }
 0x465   : > { %2048 = vmatpush3.msra.mxu0 %v1576_v36 }
 0x467   : > { %1075 = vadd.xlane.f32.xlu1 %v1074_v18 }
 0x46f   : > { %v2171_v19 = vpop.eup %2170 }
 0x470   : > { %2039 = vmatmul.mubr.msk.f32.vlgmr.msra.gmra.mxu1 %vm1058_vm4, %v2171_v19  ;;  %v1402_v20 = vsel %vm1058_vm4, %v2171_v19, 0.0 }
 0x471   : > { %1403 = vadd.xlane.f32.xlu0 %v1402_v20 }
 0x4e8   : > { %v1401_v21 = vpop.xlane.xlu1 %1400 }
 0x4ec   : > { %v1073_v22 = vpop.xlane.xlu1 %1072 }
 0x4ed   : > { %2172 = vrcp.f32 %v1073_v22 }
 0x4f0   : > { %v1076_v23 = vpop.xlane.xlu1 %1075 }
 0x4f1   : > { %2174 = vrcp.f32 %v1076_v23 }
 0x4f2   : > { %2176 = vrcp.f32 %v1401_v21 }
 0x4fa   : > { %v2173_v24 = vpop.eup %2172  ;;  %v1404_v31 = vpop.xlane.xlu0 %1403 }
 0x4fb   : > { %v1225_v25 = vmul.f32 %v2173_v24, %v1146_v63  ;;  %2178 = vrcp.f32 %v1404_v31 }
 0x4fd   : > { %1227 = vst.msk [vmem:[#allocation2] sm:$0xff] %vm903_vm2, %v1225_v25 }
 0x4fe   : > { %v2175_v26 = vpop.eup %2174 }
 0x4ff   : > { %v1226_v27 = vmul.f32 %v2175_v26, %v1219_v1  ;;  %v2177_v28 = vpop.eup %2176 }
 0x501   : > { %1228 = vst.msk [vmem:[#allocation2 + $0x8] sm:$0xff] %vm903_vm2, %v1226_v27 }
 0x508   : > { %v2179_v37 = vpop.eup %2178 }
 0x51e   : > { %v1478_v29 = vpop.f32.mrf.mxu0 }
 0x51f   : > { %v1561_v30 = vmul.f32 %v2177_v28, %v1478_v29 }
 0x520   : > { %v2035_v32 = vpop.f32.mrf.mxu0 }
 0x521   : > { %1565 = vrot.lane.b32.xlu1 %v1561_v30, %s2497_s4 }
 0x530   : > { %v1555_v38 = vpop.f32.mrf.mxu1 }
 0x531   : > { %v1562_v39 = vmul.f32 %v2179_v37, %v1555_v38 }
 0x532   : > { %v2040_v40 = vpop.f32.mrf.mxu1 }
 0x533   : > { %1567 = vrot.lane.b32.xlu0 %v1562_v39, %s2497_s4 }
 0x593   : > { %v1566_v41 = vpop.permute.xlu1 %1565 }
 0x594   : > { %1572 = vst.msk [vmem:[#allocation2] sm:$0xff] %vm1571_vm6, %v1566_v41 }
 0x59b   : > { %v1574_v42 = vld [vmem:[#allocation2] sm:$0xff] }
 0x59c   : > { %2049 = vmatprep.mubr.msk.f32.mxu0 %vm629_vm0, %v1574_v42 }
 0x5a5   : > { %v1568_v43 = vpop.permute.xlu0 %1567 }
 0x5a6   : > { %1573 = vst.msk [vmem:[#allocation2 + $0x8] sm:$0xff] %vm1571_vm6, %v1568_v43 }
 0x5ad   : > { %v1575_v44 = vld [vmem:[#allocation2 + $0x8] sm:$0xff] }
 0x5ae   : > { %2050 = vmatmul.mubr.msk.f32.vlgmr.msra.gmra.mxu0 %vm629_vm0, %v1575_v44 }
 0x66e   : > { %v2051_v46 = vpop.f32.mrf.mxu0 }
 0x66f   : > { %v1665_v47 = vadd.f32 %v2051_v46, %v1911_v45 }
 0x670   : > { %v1659_v48 = vpop.f32.mrf.mxu0 }
 0x671   : > { %1669 = vst.msk [vmem:[%s606_s11 + $0x8] sm:$0xff] %vm629_vm0, %v1665_v47  ;;  %v1660_v49 = vadd.f32 %v1911_v45, %v1659_v48 }
 0x673   : > { %1668 = vst.msk [vmem:[%s606_s11] sm:$0xff] %vm629_vm0, %v1660_v49 }
 0x674   : > { %2409 = shalt.err (!%p2406_p0)
}
 0x675   : > { %s2410_s17 = scalar_lea.hbm %s2973_s19, 256  ;;  %s2414_s6 = scalar_lea.hbm %s3094_s14, 512 }
 0x676   : > { %p2411_p9 = scmp.ne.s32.totalorder %s2973_s19, %s2410_s17  ;;  %p2415_p8 = scmp.lt.s32.totalorder %s2973_s19, %s3094_s14 }
 0x677   : > { %p2416_p11 = scmp.lt.s32.totalorder %s2414_s6, %s2410_s17 }
 0x678   : > { %p2412_p1 = pnand %p2411_p9, %p3095_p10 }
 0x679   : > { %p2417_p12 = por %p2416_p11, %p2415_p8 }
 0x67a   : > { %p2413_p6 = pneg %p2412_p1 }
 0x67c   : > { %p2418_p4 = pnand %p2417_p12, %p2413_p6 }
 0x67e   : > { %2421 = shalt.err (!%p2418_p4)
}
 0x67f   : > { %s2499_s4 = smov 128   ;;  %s2500_s23 = smov 8  }
 0x680   : > { %2076 = dma.vmem_to_hbm [thread:$0]  (%p3095_p10), %s2968_s29, 256, %s2973_s19, %s1671_s8, %s2499_s4, %s2499_s4, %s2500_s23  }
 0x681 PF: > { %s3096_s30 = sld [smem:[#allocation25_spill]]  ;;  %p3099_p3 = scmp.ge.s32.totalorder %s2480_s24, 2 }
 0x682   : > { %s3097_s20 = sld [smem:[#allocation27_spill]] }
 0x687   : > { %s1699_s11 = sand.u32 1, %s3096_s30  }
 0x688   : > { %p3098_p5 = scmp.ne.s32.totalorder %s3097_s20, 0  ;;  %s1700_s26 = scalar_lea.sflag [#allocation5], %s1699_s11 }
 0x68a   : > { %p2105_p7 = pnand %p3099_p3, %p3098_p5 }
 0x68c   : > { %p2106_p2 = pneg %p2105_p7 }
 0x68e   : > { %2463 = dma.done.wait (%p2106_p2), %s1700_s26, 256  }
 0x68f   : > { %2465 = vsyncadd (%p2106_p2), %s1700_s26, 4294967040  ;;  %s3100_s24 = sld [smem:[#allocation28_spill]]  ;;  %s3103_s21 = smov %s2472_s22 }
 0x690   : > { %s3101_s1 = sld [smem:[#allocation26_spill]] }
 0x691   : > { %s3102_s23 = sld [smem:[#allocation30_spill]] }
 0x695   : > { %p33_p13 = scmp.ge.s32.totalorder %s3100_s24, 4  }
 0x696   : > { %s3104_s22 = smov %s3101_s1 }
 0x697   :  { %35 = sbr.rel (!%p33_p13) target bundleno = 20 (0x14), region = 166 }
 0x69c   :  { %1705 = vsyncpa [#allocation4], 1 }
 0x69d   :  { %1707 = vsyncpa [#allocation4 + $0x1], 1 }
 0x69e   :  { %1708 = vsyncpa [#allocation7], 1 }
 0x69f   :  { %1710 = vsyncpa [#allocation7 + $0x1], 1 }
 0x6a0   :  { %1711 = vsyncpa [#allocation10], 1 }
 0x6a1   :  { %1713 = vsyncpa [#allocation10 + $0x1], 1 }
 0x6a2   :  { %1714 = vsyncpa [#allocation13], 1 }
 0x6a3   :  { %1715 = vsyncpa [#allocation16], 1 }
 0x6a4   :  { %1716 = vsyncpa [#allocation5], 1 }
 0x6a5   :  { %1718 = vsyncpa [#allocation5 + $0x1], 1 }

</bundles_post_ra>
